<compile_context>
chip_gen: v7x
topology: tpu7x:2x2x1
jax: 0.10.0
libtpu: 0.0.40
codegen_flags: <defaults>
</compile_context>

<pallas_src>
import functools
import math

import jax
import jax.numpy as jnp
from jax.experimental import pallas as pl
from jax.experimental.pallas import tpu as pltpu


_ROWS_PER_GROUP = 8                       # one (8, D) slab per store -> unmasked vst
_GROUPS_IN_FLIGHT = 4                     # ~32 row DMAs outstanding (hides HBM latency)
_NUM_SLOTS = _GROUPS_IN_FLIGHT + 1        # +1 so a refill never targets the slab being read


def _round_up(x, m):
    return ((x + m - 1) // m) * m


def _generate_positional_encoding(seq_len, embedding_dimension):
    # Matches Embedding._generate_positional_encoding (without the leading
    # batch dim; broadcasting over batch happens naturally).
    position = jnp.arange(seq_len, dtype=jnp.float32)[:, None]            # (S, 1)
    div_term = jnp.exp(
        jnp.arange(0, embedding_dimension, 2, dtype=jnp.float32)
        * -(math.log(10000.0) / embedding_dimension)
    )                                                                      # (D/2,)
    pe = jnp.zeros((seq_len, embedding_dimension), dtype=jnp.float32)
    pe = pe.at[:, 0::2].set(jnp.sin(position * div_term))
    pe = pe.at[:, 1::2].set(jnp.cos(position * div_term))
    return pe                                                              # (S, D)


def _choose_seq_tile(S, D, vmem_budget_bytes=8 * 1024 * 1024):
    """Tokens per tile T (multiple of 8) and padded sequence length.

    VMEM residents per step: double-buffered (T, D) out block + double-buffered
    (T, D) pos block (f32) ~= 16*T*D bytes, plus the small (NUM_SLOTS, 8, D)
    staging buffer.  Cap T so this stays well under the default scoped VMEM on
    every generation (v7x: 32 MiB scoped / 64 MiB physical).
    """
    t_cap = vmem_budget_bytes // (16 * D)
    t_cap = max(_ROWS_PER_GROUP, (t_cap // _ROWS_PER_GROUP) * _ROWS_PER_GROUP)
    t = min(256, t_cap)
    t = min(t, _round_up(S, _ROWS_PER_GROUP))
    s_pad = _round_up(S, t)
    return t, s_pad


def _embedding_kernel(T, ids_ref, table_hbm, pos_ref, out_ref, row_buf, sem):
    """Gather T embedding rows straight from HBM and add positional encoding.

    ids_ref   : (B, S_pad)  int32  scalar-prefetch, SMEM (addresses only)
    table_hbm : (V, D)      f32    raw HBM ref (memory_space=pl.ANY)
    pos_ref   : (T, D)      f32    positional-encoding tile (VMEM)
    out_ref   : (T, D)      f32    output tile (VMEM resident)
    row_buf   : (NS, 8, D)  f32    staging slabs for in-flight row DMAs
    sem       : (NS,)              DMA semaphores, one per staging slab
    """
    j = pl.program_id(0)            # sequence-tile index
    b = pl.program_id(1)            # batch index
    col0 = j * T                    # first sequence position of this tile
    n_grp = T // _ROWS_PER_GROUP

    def issue_group(g, slot):
        # 8 independent row DMAs: HBM table row -> one sublane of slab `slot`.
        base = col0 + g * _ROWS_PER_GROUP
        for r in range(_ROWS_PER_GROUP):                    # static unroll
            tok = ids_ref[b, base + r]
            pltpu.make_async_copy(
                table_hbm.at[pl.ds(tok, 1), :],
                row_buf.at[slot, pl.ds(r, 1), :],
                sem.at[slot],
            ).start()

    def wait_group(slot):
        for r in range(_ROWS_PER_GROUP):
            pltpu.make_async_copy(
                table_hbm.at[pl.ds(0, 1), :],               # shape-only descriptor
                row_buf.at[slot, pl.ds(r, 1), :],
                sem.at[slot],
            ).wait()

    # Prime the pipeline: up to _GROUPS_IN_FLIGHT slabs (32 rows) in flight.
    for g in range(min(_GROUPS_IN_FLIGHT, n_grp)):
        issue_group(g, g)                                   # g < _NUM_SLOTS

    @pl.loop(0, n_grp)
    def _(g):
        slot = g % _NUM_SLOTS
        wait_group(slot)

        # Refill a *different* slab before consuming this one, so the DMA
        # queue stays full with no read/overwrite hazard.
        @pl.when(g + _GROUPS_IN_FLIGHT < n_grp)
        def _():
            issue_group(g + _GROUPS_IN_FLIGHT,
                        (g + _GROUPS_IN_FLIGHT) % _NUM_SLOTS)

        # Lane-dense (8, D) slab: add positional encoding, unmasked store into
        # the resident (T, D) output block at an 8-aligned offset.
        g8 = pl.multiple_of(g * _ROWS_PER_GROUP, _ROWS_PER_GROUP)
        out_ref[pl.ds(g8, _ROWS_PER_GROUP), :] = (
            row_buf[slot] + pos_ref[pl.ds(g8, _ROWS_PER_GROUP), :]
        )


def embedding_forward(token_ids, emb_table, pos_enc_buffer, context_length):
    """Pallas equivalent of Embedding.forward.

    token_ids      : (B, S) int32
    emb_table      : (V, D) float32  (nn.Embedding weight)
    pos_enc_buffer : (context_length, D) float32 (registered buffer, no batch dim)
    returns        : (B, S, D) float32
    """
    B, S = token_ids.shape
    V, D = emb_table.shape

    if S > context_length:
        pos = _generate_positional_encoding(S, D)
    else:
        pos = pos_enc_buffer[:S, :]
    pos = pos.astype(jnp.float32)

    T, S_pad = _choose_seq_tile(S, D)
    num_seq_tiles = S_pad // T

    # Clamp so an out-of-range id can never drive an OOB row DMA (jnp.take-like
    # behaviour; PyTorch's nn.Embedding would raise instead).
    ids = jnp.clip(token_ids.astype(jnp.int32), 0, V - 1)
    if S_pad != S:
        # Pad the sequence so every (T, D) block is full and 8-row aligned;
        # padded rows gather table row 0 + zero pos and are sliced off below.
        ids = jnp.pad(ids, ((0, 0), (0, S_pad - S)))
        pos = jnp.pad(pos, ((0, S_pad - S), (0, 0)))

    # NOTE: the (B, S_pad) id array is scalar-prefetched whole into SMEM (fine
    # up to ~100K tokens).  For very large B*S, stage per-tile id slices into
    # SMEM instead to bound SMEM usage at T*4 bytes.
    kernel = functools.partial(_embedding_kernel, T)

    bytes_accessed = (
        B * S_pad * D * 4        # gathered table rows
        + S_pad * D * 4          # positional encoding (fetched once per seq tile)
        + B * S_pad * D * 4      # output
        + B * S_pad * 4          # token ids
    )

    out = pl.pallas_call(
        kernel,
        out_shape=jax.ShapeDtypeStruct((B, S_pad, D), jnp.float32),
        grid_spec=pltpu.PrefetchScalarGridSpec(
            num_scalar_prefetch=1,
            # Sequence tiles outer, batch inner: the pos block index is
            # constant along the inner axis, so each pos tile is DMA'd once.
            grid=(num_seq_tiles, B),
            in_specs=[
                pl.BlockSpec(memory_space=pl.ANY),                  # table stays in HBM
                pl.BlockSpec((T, D), lambda j, b, ids: (j, 0)),     # pos tile -> VMEM
            ],
            out_specs=pl.BlockSpec((None, T, D), lambda j, b, ids: (b, j, 0)),
            scratch_shapes=[
                pltpu.VMEM((_NUM_SLOTS, _ROWS_PER_GROUP, D), jnp.float32),
                pltpu.SemaphoreType.DMA((_NUM_SLOTS,)),
            ],
        ),
        compiler_params=pltpu.CompilerParams(
            dimension_semantics=("parallel", "parallel"),
        ),
        cost_estimate=pl.CostEstimate(
            flops=B * S_pad * D, transcendentals=0, bytes_accessed=bytes_accessed
        ),
    )(ids, emb_table.astype(jnp.float32), pos)

    if S_pad != S:
        out = out[:, :S, :]
    return out


if __name__ == "__main__":
    # Small, deterministic setup consistent with the module's __init__.
    vocabulary_size = 256
    embedding_dimension = 128
    context_length = 16
    batch_size = 2
    seq_len = 8

    key = jax.random.PRNGKey(0)
    k_emb, k_ids = jax.random.split(key)

    # nn.Embedding initializes its weight from N(0, 1).
    emb_table = jax.random.normal(
        k_emb, (vocabulary_size, embedding_dimension), dtype=jnp.float32
    )
    pos_enc_buffer = _generate_positional_encoding(context_length, embedding_dimension)

    token_ids = jax.random.randint(
        k_ids, (batch_size, seq_len), 0, vocabulary_size, dtype=jnp.int32
    )

    out = embedding_forward(token_ids, emb_table, pos_enc_buffer, context_length)
    out = jax.block_until_ready(out)

    # Reference check in plain JAX (same semantics as the PyTorch forward).
    ref = jnp.take(emb_table, token_ids, axis=0) + pos_enc_buffer[:seq_len][None, :, :]
    assert out.shape == (batch_size, seq_len, embedding_dimension)
    assert jnp.allclose(out, ref, atol=1e-5, rtol=1e-5), "mismatch vs reference"

    print("KERNEL_OK")
</pallas_src>

<mosaic_0001>
module attributes {stable_mosaic.version = 11 : i64} {
  func.func @_embedding_kernel(%arg0: i32, %arg1: i32, %arg2: memref<2x8xi32, #tpu.memory_space<smem>>, %arg3: memref<256x128xf32, #tpu.memory_space<any>>, %arg4: memref<8x128xf32, #tpu.memory_space<vmem>>, %arg5: memref<1x8x128xf32, #tpu.memory_space<vmem>>, %arg6: memref<5x8x128xf32, #tpu.memory_space<vmem>>, %arg7: memref<5x!tpu.dma_semaphore, #tpu.memory_space<semaphore_mem>>) attributes {dimension_semantics = [#tpu.dimension_semantics<parallel>, #tpu.dimension_semantics<parallel>], iteration_bounds = array<i64: 1, 2>, scalar_prefetch = 1 : i64, scratch_operands = 2 : i64, tpu.core_type = #tpu.core_type<tc>, window_params = [{}, {transform_indices = @transform_1, window_bounds = array<i64: 8, 128>}, {transform_indices = @transform_2, window_bounds = array<i64: 1, 8, 128>}]} {
    %c8_i32 = arith.constant 8 : i32
    %0 = arith.muli %arg0, %c8_i32 : i32
    %c0_i32 = arith.constant 0 : i32
    %1 = arith.addi %0, %c0_i32 : i32
    %c0_i32_0 = arith.constant 0 : i32
    %2 = arith.addi %1, %c0_i32_0 : i32
    %3 = arith.index_cast %arg1 : i32 to index
    %4 = arith.index_cast %2 : i32 to index
    %5 = memref.load %arg2[%3, %4] : memref<2x8xi32, #tpu.memory_space<smem>>
    %c0_i32_1 = arith.constant 0 : i32
    %c0_i32_2 = arith.constant 0 : i32
    %c0_i32_3 = arith.constant 0 : i32
    %6 = tpu.memref_slice %arg3[%5, %c0_i32_3] : memref<256x128xf32, #tpu.memory_space<any>> -> memref<1x128xf32, #tpu.memory_space<any>>
    %c0_i32_4 = arith.constant 0 : i32
    %c0_i32_5 = arith.constant 0 : i32
    %7 = tpu.memref_slice %arg6[%c0_i32_1, %c0_i32_4, %c0_i32_5] : memref<5x8x128xf32, #tpu.memory_space<vmem>> -> memref<1x1x128xf32, #tpu.memory_space<vmem>>
    %8 = tpu.memref_squeeze %7 : memref<1x1x128xf32, #tpu.memory_space<vmem>> -> memref<1x128xf32, #tpu.memory_space<vmem>>
    %9 = tpu.memref_slice %arg7[%c0_i32_2] : memref<5x!tpu.dma_semaphore, #tpu.memory_space<semaphore_mem>> -> memref<1x!tpu.dma_semaphore, #tpu.memory_space<semaphore_mem>>
    %10 = tpu.memref_squeeze %9 : memref<1x!tpu.dma_semaphore, #tpu.memory_space<semaphore_mem>> -> memref<!tpu.dma_semaphore, #tpu.memory_space<semaphore_mem>>
    tpu.enqueue_dma source(%6 : memref<1x128xf32, #tpu.memory_space<any>>) target(%8 : memref<1x128xf32, #tpu.memory_space<vmem>>) target_semaphore(%10 : memref<!tpu.dma_semaphore, #tpu.memory_space<semaphore_mem>>)
    %c1_i32 = arith.constant 1 : i32
    %11 = arith.addi %1, %c1_i32 : i32
    %12 = arith.index_cast %arg1 : i32 to index
    %13 = arith.index_cast %11 : i32 to index
    %14 = memref.load %arg2[%12, %13] : memref<2x8xi32, #tpu.memory_space<smem>>
    %c0_i32_6 = arith.constant 0 : i32
    %c0_i32_7 = arith.constant 0 : i32
    %c0_i32_8 = arith.constant 0 : i32
    %15 = tpu.memref_slice %arg3[%14, %c0_i32_8] : memref<256x128xf32, #tpu.memory_space<any>> -> memref<1x128xf32, #tpu.memory_space<any>>
    %c1_i32_9 = arith.constant 1 : i32
    %c0_i32_10 = arith.constant 0 : i32
    %16 = tpu.memref_slice %arg6[%c0_i32_6, %c1_i32_9, %c0_i32_10] : memref<5x8x128xf32, #tpu.memory_space<vmem>> -> memref<1x1x128xf32, #tpu.memory_space<vmem>>
    %17 = tpu.memref_squeeze %16 : memref<1x1x128xf32, #tpu.memory_space<vmem>> -> memref<1x128xf32, #tpu.memory_space<vmem>>
    %18 = tpu.memref_slice %arg7[%c0_i32_7] : memref<5x!tpu.dma_semaphore, #tpu.memory_space<semaphore_mem>> -> memref<1x!tpu.dma_semaphore, #tpu.memory_space<semaphore_mem>>
    %19 = tpu.memref_squeeze %18 : memref<1x!tpu.dma_semaphore, #tpu.memory_space<semaphore_mem>> -> memref<!tpu.dma_semaphore, #tpu.memory_space<semaphore_mem>>
    tpu.enqueue_dma source(%15 : memref<1x128xf32, #tpu.memory_space<any>>) target(%17 : memref<1x128xf32, #tpu.memory_space<vmem>>) target_semaphore(%19 : memref<!tpu.dma_semaphore, #tpu.memory_space<semaphore_mem>>)
    %c2_i32 = arith.constant 2 : i32
    %20 = arith.addi %1, %c2_i32 : i32
    %21 = arith.index_cast %arg1 : i32 to index
    %22 = arith.index_cast %20 : i32 to index
    %23 = memref.load %arg2[%21, %22] : memref<2x8xi32, #tpu.memory_space<smem>>
    %c0_i32_11 = arith.constant 0 : i32
    %c0_i32_12 = arith.constant 0 : i32
    %c0_i32_13 = arith.constant 0 : i32
    %24 = tpu.memref_slice %arg3[%23, %c0_i32_13] : memref<256x128xf32, #tpu.memory_space<any>> -> memref<1x128xf32, #tpu.memory_space<any>>
    %c2_i32_14 = arith.constant 2 : i32
    %c0_i32_15 = arith.constant 0 : i32
    %25 = tpu.memref_slice %arg6[%c0_i32_11, %c2_i32_14, %c0_i32_15] : memref<5x8x128xf32, #tpu.memory_space<vmem>> -> memref<1x1x128xf32, #tpu.memory_space<vmem>>
    %26 = tpu.memref_squeeze %25 : memref<1x1x128xf32, #tpu.memory_space<vmem>> -> memref<1x128xf32, #tpu.memory_space<vmem>>
    %27 = tpu.memref_slice %arg7[%c0_i32_12] : memref<5x!tpu.dma_semaphore, #tpu.memory_space<semaphore_mem>> -> memref<1x!tpu.dma_semaphore, #tpu.memory_space<semaphore_mem>>
    %28 = tpu.memref_squeeze %27 : memref<1x!tpu.dma_semaphore, #tpu.memory_space<semaphore_mem>> -> memref<!tpu.dma_semaphore, #tpu.memory_space<semaphore_mem>>
    tpu.enqueue_dma source(%24 : memref<1x128xf32, #tpu.memory_space<any>>) target(%26 : memref<1x128xf32, #tpu.memory_space<vmem>>) target_semaphore(%28 : memref<!tpu.dma_semaphore, #tpu.memory_space<semaphore_mem>>)
    %c3_i32 = arith.constant 3 : i32
    %29 = arith.addi %1, %c3_i32 : i32
    %30 = arith.index_cast %arg1 : i32 to index
    %31 = arith.index_cast %29 : i32 to index
    %32 = memref.load %arg2[%30, %31] : memref<2x8xi32, #tpu.memory_space<smem>>
    %c0_i32_16 = arith.constant 0 : i32
    %c0_i32_17 = arith.constant 0 : i32
    %c0_i32_18 = arith.constant 0 : i32
    %33 = tpu.memref_slice %arg3[%32, %c0_i32_18] : memref<256x128xf32, #tpu.memory_space<any>> -> memref<1x128xf32, #tpu.memory_space<any>>
    %c3_i32_19 = arith.constant 3 : i32
    %c0_i32_20 = arith.constant 0 : i32
    %34 = tpu.memref_slice %arg6[%c0_i32_16, %c3_i32_19, %c0_i32_20] : memref<5x8x128xf32, #tpu.memory_space<vmem>> -> memref<1x1x128xf32, #tpu.memory_space<vmem>>
    %35 = tpu.memref_squeeze %34 : memref<1x1x128xf32, #tpu.memory_space<vmem>> -> memref<1x128xf32, #tpu.memory_space<vmem>>
    %36 = tpu.memref_slice %arg7[%c0_i32_17] : memref<5x!tpu.dma_semaphore, #tpu.memory_space<semaphore_mem>> -> memref<1x!tpu.dma_semaphore, #tpu.memory_space<semaphore_mem>>
    %37 = tpu.memref_squeeze %36 : memref<1x!tpu.dma_semaphore, #tpu.memory_space<semaphore_mem>> -> memref<!tpu.dma_semaphore, #tpu.memory_space<semaphore_mem>>
    tpu.enqueue_dma source(%33 : memref<1x128xf32, #tpu.memory_space<any>>) target(%35 : memref<1x128xf32, #tpu.memory_space<vmem>>) target_semaphore(%37 : memref<!tpu.dma_semaphore, #tpu.memory_space<semaphore_mem>>)
    %c4_i32 = arith.constant 4 : i32
    %38 = arith.addi %1, %c4_i32 : i32
    %39 = arith.index_cast %arg1 : i32 to index
    %40 = arith.index_cast %38 : i32 to index
    %41 = memref.load %arg2[%39, %40] : memref<2x8xi32, #tpu.memory_space<smem>>
    %c0_i32_21 = arith.constant 0 : i32
    %c0_i32_22 = arith.constant 0 : i32
    %c0_i32_23 = arith.constant 0 : i32
    %42 = tpu.memref_slice %arg3[%41, %c0_i32_23] : memref<256x128xf32, #tpu.memory_space<any>> -> memref<1x128xf32, #tpu.memory_space<any>>
    %c4_i32_24 = arith.constant 4 : i32
    %c0_i32_25 = arith.constant 0 : i32
    %43 = tpu.memref_slice %arg6[%c0_i32_21, %c4_i32_24, %c0_i32_25] : memref<5x8x128xf32, #tpu.memory_space<vmem>> -> memref<1x1x128xf32, #tpu.memory_space<vmem>>
    %44 = tpu.memref_squeeze %43 : memref<1x1x128xf32, #tpu.memory_space<vmem>> -> memref<1x128xf32, #tpu.memory_space<vmem>>
    %45 = tpu.memref_slice %arg7[%c0_i32_22] : memref<5x!tpu.dma_semaphore, #tpu.memory_space<semaphore_mem>> -> memref<1x!tpu.dma_semaphore, #tpu.memory_space<semaphore_mem>>
    %46 = tpu.memref_squeeze %45 : memref<1x!tpu.dma_semaphore, #tpu.memory_space<semaphore_mem>> -> memref<!tpu.dma_semaphore, #tpu.memory_space<semaphore_mem>>
    tpu.enqueue_dma source(%42 : memref<1x128xf32, #tpu.memory_space<any>>) target(%44 : memref<1x128xf32, #tpu.memory_space<vmem>>) target_semaphore(%46 : memref<!tpu.dma_semaphore, #tpu.memory_space<semaphore_mem>>)
    %c5_i32 = arith.constant 5 : i32
    %47 = arith.addi %1, %c5_i32 : i32
    %48 = arith.index_cast %arg1 : i32 to index
    %49 = arith.index_cast %47 : i32 to index
    %50 = memref.load %arg2[%48, %49] : memref<2x8xi32, #tpu.memory_space<smem>>
    %c0_i32_26 = arith.constant 0 : i32
    %c0_i32_27 = arith.constant 0 : i32
    %c0_i32_28 = arith.constant 0 : i32
    %51 = tpu.memref_slice %arg3[%50, %c0_i32_28] : memref<256x128xf32, #tpu.memory_space<any>> -> memref<1x128xf32, #tpu.memory_space<any>>
    %c5_i32_29 = arith.constant 5 : i32
    %c0_i32_30 = arith.constant 0 : i32
    %52 = tpu.memref_slice %arg6[%c0_i32_26, %c5_i32_29, %c0_i32_30] : memref<5x8x128xf32, #tpu.memory_space<vmem>> -> memref<1x1x128xf32, #tpu.memory_space<vmem>>
    %53 = tpu.memref_squeeze %52 : memref<1x1x128xf32, #tpu.memory_space<vmem>> -> memref<1x128xf32, #tpu.memory_space<vmem>>
    %54 = tpu.memref_slice %arg7[%c0_i32_27] : memref<5x!tpu.dma_semaphore, #tpu.memory_space<semaphore_mem>> -> memref<1x!tpu.dma_semaphore, #tpu.memory_space<semaphore_mem>>
    %55 = tpu.memref_squeeze %54 : memref<1x!tpu.dma_semaphore, #tpu.memory_space<semaphore_mem>> -> memref<!tpu.dma_semaphore, #tpu.memory_space<semaphore_mem>>
    tpu.enqueue_dma source(%51 : memref<1x128xf32, #tpu.memory_space<any>>) target(%53 : memref<1x128xf32, #tpu.memory_space<vmem>>) target_semaphore(%55 : memref<!tpu.dma_semaphore, #tpu.memory_space<semaphore_mem>>)
    %c6_i32 = arith.constant 6 : i32
    %56 = arith.addi %1, %c6_i32 : i32
    %57 = arith.index_cast %arg1 : i32 to index
    %58 = arith.index_cast %56 : i32 to index
    %59 = memref.load %arg2[%57, %58] : memref<2x8xi32, #tpu.memory_space<smem>>
    %c0_i32_31 = arith.constant 0 : i32
    %c0_i32_32 = arith.constant 0 : i32
    %c0_i32_33 = arith.constant 0 : i32
    %60 = tpu.memref_slice %arg3[%59, %c0_i32_33] : memref<256x128xf32, #tpu.memory_space<any>> -> memref<1x128xf32, #tpu.memory_space<any>>
    %c6_i32_34 = arith.constant 6 : i32
    %c0_i32_35 = arith.constant 0 : i32
    %61 = tpu.memref_slice %arg6[%c0_i32_31, %c6_i32_34, %c0_i32_35] : memref<5x8x128xf32, #tpu.memory_space<vmem>> -> memref<1x1x128xf32, #tpu.memory_space<vmem>>
    %62 = tpu.memref_squeeze %61 : memref<1x1x128xf32, #tpu.memory_space<vmem>> -> memref<1x128xf32, #tpu.memory_space<vmem>>
    %63 = tpu.memref_slice %arg7[%c0_i32_32] : memref<5x!tpu.dma_semaphore, #tpu.memory_space<semaphore_mem>> -> memref<1x!tpu.dma_semaphore, #tpu.memory_space<semaphore_mem>>
    %64 = tpu.memref_squeeze %63 : memref<1x!tpu.dma_semaphore, #tpu.memory_space<semaphore_mem>> -> memref<!tpu.dma_semaphore, #tpu.memory_space<semaphore_mem>>
    tpu.enqueue_dma source(%60 : memref<1x128xf32, #tpu.memory_space<any>>) target(%62 : memref<1x128xf32, #tpu.memory_space<vmem>>) target_semaphore(%64 : memref<!tpu.dma_semaphore, #tpu.memory_space<semaphore_mem>>)
    %c7_i32 = arith.constant 7 : i32
    %65 = arith.addi %1, %c7_i32 : i32
    %66 = arith.index_cast %arg1 : i32 to index
    %67 = arith.index_cast %65 : i32 to index
    %68 = memref.load %arg2[%66, %67] : memref<2x8xi32, #tpu.memory_space<smem>>
    %c0_i32_36 = arith.constant 0 : i32
    %c0_i32_37 = arith.constant 0 : i32
    %c0_i32_38 = arith.constant 0 : i32
    %69 = tpu.memref_slice %arg3[%68, %c0_i32_38] : memref<256x128xf32, #tpu.memory_space<any>> -> memref<1x128xf32, #tpu.memory_space<any>>
    %c7_i32_39 = arith.constant 7 : i32
    %c0_i32_40 = arith.constant 0 : i32
    %70 = tpu.memref_slice %arg6[%c0_i32_36, %c7_i32_39, %c0_i32_40] : memref<5x8x128xf32, #tpu.memory_space<vmem>> -> memref<1x1x128xf32, #tpu.memory_space<vmem>>
    %71 = tpu.memref_squeeze %70 : memref<1x1x128xf32, #tpu.memory_space<vmem>> -> memref<1x128xf32, #tpu.memory_space<vmem>>
    %72 = tpu.memref_slice %arg7[%c0_i32_37] : memref<5x!tpu.dma_semaphore, #tpu.memory_space<semaphore_mem>> -> memref<1x!tpu.dma_semaphore, #tpu.memory_space<semaphore_mem>>
    %73 = tpu.memref_squeeze %72 : memref<1x!tpu.dma_semaphore, #tpu.memory_space<semaphore_mem>> -> memref<!tpu.dma_semaphore, #tpu.memory_space<semaphore_mem>>
    tpu.enqueue_dma source(%69 : memref<1x128xf32, #tpu.memory_space<any>>) target(%71 : memref<1x128xf32, #tpu.memory_space<vmem>>) target_semaphore(%73 : memref<!tpu.dma_semaphore, #tpu.memory_space<semaphore_mem>>)
    %c0_i32_41 = arith.constant 0 : i32
    %c1_i32_42 = arith.constant 1 : i32
    %74 = arith.muli %c0_i32_41, %c1_i32_42 : i32
    %c0_i32_43 = arith.constant 0 : i32
    %75 = arith.addi %c0_i32_43, %74 : i32
    %c5_i32_44 = arith.constant 5 : i32
    %c0_i32_45 = arith.constant 0 : i32
    %76 = arith.cmpi eq, %c5_i32_44, %c0_i32_45 : i32
    %c1_i32_46 = arith.constant 1 : i32
    %77 = arith.select %76, %c1_i32_46, %c5_i32_44 : i32
    %78 = arith.remsi %75, %77 : i32
    %c0_i32_47 = arith.constant 0 : i32
    %79 = arith.cmpi ne, %78, %c0_i32_47 : i32
    %c0_i32_48 = arith.constant 0 : i32
    %80 = arith.cmpi slt, %78, %c0_i32_48 : i32
    %c0_i32_49 = arith.constant 0 : i32
    %81 = arith.cmpi slt, %77, %c0_i32_49 : i32
    %82 = arith.xori %80, %81 : i1
    %83 = arith.andi %82, %79 : i1
    %84 = arith.addi %78, %77 : i32
    %85 = arith.select %83, %84, %78 : i32
    %c0_i32_50 = arith.constant 0 : i32
    %c0_i32_51 = arith.constant 0 : i32
    %86 = tpu.memref_slice %arg3[%c0_i32_50, %c0_i32_51] : memref<256x128xf32, #tpu.memory_space<any>> -> memref<1x128xf32, #tpu.memory_space<any>>
    %c0_i32_52 = arith.constant 0 : i32
    %c0_i32_53 = arith.constant 0 : i32
    %87 = tpu.memref_slice %arg6[%85, %c0_i32_52, %c0_i32_53] : memref<5x8x128xf32, #tpu.memory_space<vmem>> -> memref<1x1x128xf32, #tpu.memory_space<vmem>>
    %88 = tpu.memref_squeeze %87 : memref<1x1x128xf32, #tpu.memory_space<vmem>> -> memref<1x128xf32, #tpu.memory_space<vmem>>
    %89 = tpu.memref_slice %arg7[%85] : memref<5x!tpu.dma_semaphore, #tpu.memory_space<semaphore_mem>> -> memref<1x!tpu.dma_semaphore, #tpu.memory_space<semaphore_mem>>
    %90 = tpu.memref_squeeze %89 : memref<1x!tpu.dma_semaphore, #tpu.memory_space<semaphore_mem>> -> memref<!tpu.dma_semaphore, #tpu.memory_space<semaphore_mem>>
    tpu.wait_dma2 semaphore(%90 : memref<!tpu.dma_semaphore, #tpu.memory_space<semaphore_mem>>) src(%86 : memref<1x128xf32, #tpu.memory_space<any>>) dst(%88 : memref<1x128xf32, #tpu.memory_space<vmem>>)
    %c0_i32_54 = arith.constant 0 : i32
    %c0_i32_55 = arith.constant 0 : i32
    %91 = tpu.memref_slice %arg3[%c0_i32_54, %c0_i32_55] : memref<256x128xf32, #tpu.memory_space<any>> -> memref<1x128xf32, #tpu.memory_space<any>>
    %c1_i32_56 = arith.constant 1 : i32
    %c0_i32_57 = arith.constant 0 : i32
    %92 = tpu.memref_slice %arg6[%85, %c1_i32_56, %c0_i32_57] : memref<5x8x128xf32, #tpu.memory_space<vmem>> -> memref<1x1x128xf32, #tpu.memory_space<vmem>>
    %93 = tpu.memref_squeeze %92 : memref<1x1x128xf32, #tpu.memory_space<vmem>> -> memref<1x128xf32, #tpu.memory_space<vmem>>
    %94 = tpu.memref_slice %arg7[%85] : memref<5x!tpu.dma_semaphore, #tpu.memory_space<semaphore_mem>> -> memref<1x!tpu.dma_semaphore, #tpu.memory_space<semaphore_mem>>
    %95 = tpu.memref_squeeze %94 : memref<1x!tpu.dma_semaphore, #tpu.memory_space<semaphore_mem>> -> memref<!tpu.dma_semaphore, #tpu.memory_space<semaphore_mem>>
    tpu.wait_dma2 semaphore(%95 : memref<!tpu.dma_semaphore, #tpu.memory_space<semaphore_mem>>) src(%91 : memref<1x128xf32, #tpu.memory_space<any>>) dst(%93 : memref<1x128xf32, #tpu.memory_space<vmem>>)
    %c0_i32_58 = arith.constant 0 : i32
    %c0_i32_59 = arith.constant 0 : i32
    %96 = tpu.memref_slice %arg3[%c0_i32_58, %c0_i32_59] : memref<256x128xf32, #tpu.memory_space<any>> -> memref<1x128xf32, #tpu.memory_space<any>>
    %c2_i32_60 = arith.constant 2 : i32
    %c0_i32_61 = arith.constant 0 : i32
    %97 = tpu.memref_slice %arg6[%85, %c2_i32_60, %c0_i32_61] : memref<5x8x128xf32, #tpu.memory_space<vmem>> -> memref<1x1x128xf32, #tpu.memory_space<vmem>>
    %98 = tpu.memref_squeeze %97 : memref<1x1x128xf32, #tpu.memory_space<vmem>> -> memref<1x128xf32, #tpu.memory_space<vmem>>
    %99 = tpu.memref_slice %arg7[%85] : memref<5x!tpu.dma_semaphore, #tpu.memory_space<semaphore_mem>> -> memref<1x!tpu.dma_semaphore, #tpu.memory_space<semaphore_mem>>
    %100 = tpu.memref_squeeze %99 : memref<1x!tpu.dma_semaphore, #tpu.memory_space<semaphore_mem>> -> memref<!tpu.dma_semaphore, #tpu.memory_space<semaphore_mem>>
    tpu.wait_dma2 semaphore(%100 : memref<!tpu.dma_semaphore, #tpu.memory_space<semaphore_mem>>) src(%96 : memref<1x128xf32, #tpu.memory_space<any>>) dst(%98 : memref<1x128xf32, #tpu.memory_space<vmem>>)
    %c0_i32_62 = arith.constant 0 : i32
    %c0_i32_63 = arith.constant 0 : i32
    %101 = tpu.memref_slice %arg3[%c0_i32_62, %c0_i32_63] : memref<256x128xf32, #tpu.memory_space<any>> -> memref<1x128xf32, #tpu.memory_space<any>>
    %c3_i32_64 = arith.constant 3 : i32
    %c0_i32_65 = arith.constant 0 : i32
    %102 = tpu.memref_slice %arg6[%85, %c3_i32_64, %c0_i32_65] : memref<5x8x128xf32, #tpu.memory_space<vmem>> -> memref<1x1x128xf32, #tpu.memory_space<vmem>>
    %103 = tpu.memref_squeeze %102 : memref<1x1x128xf32, #tpu.memory_space<vmem>> -> memref<1x128xf32, #tpu.memory_space<vmem>>
    %104 = tpu.memref_slice %arg7[%85] : memref<5x!tpu.dma_semaphore, #tpu.memory_space<semaphore_mem>> -> memref<1x!tpu.dma_semaphore, #tpu.memory_space<semaphore_mem>>
    %105 = tpu.memref_squeeze %104 : memref<1x!tpu.dma_semaphore, #tpu.memory_space<semaphore_mem>> -> memref<!tpu.dma_semaphore, #tpu.memory_space<semaphore_mem>>
    tpu.wait_dma2 semaphore(%105 : memref<!tpu.dma_semaphore, #tpu.memory_space<semaphore_mem>>) src(%101 : memref<1x128xf32, #tpu.memory_space<any>>) dst(%103 : memref<1x128xf32, #tpu.memory_space<vmem>>)
    %c0_i32_66 = arith.constant 0 : i32
    %c0_i32_67 = arith.constant 0 : i32
    %106 = tpu.memref_slice %arg3[%c0_i32_66, %c0_i32_67] : memref<256x128xf32, #tpu.memory_space<any>> -> memref<1x128xf32, #tpu.memory_space<any>>
    %c4_i32_68 = arith.constant 4 : i32
    %c0_i32_69 = arith.constant 0 : i32
    %107 = tpu.memref_slice %arg6[%85, %c4_i32_68, %c0_i32_69] : memref<5x8x128xf32, #tpu.memory_space<vmem>> -> memref<1x1x128xf32, #tpu.memory_space<vmem>>
    %108 = tpu.memref_squeeze %107 : memref<1x1x128xf32, #tpu.memory_space<vmem>> -> memref<1x128xf32, #tpu.memory_space<vmem>>
    %109 = tpu.memref_slice %arg7[%85] : memref<5x!tpu.dma_semaphore, #tpu.memory_space<semaphore_mem>> -> memref<1x!tpu.dma_semaphore, #tpu.memory_space<semaphore_mem>>
    %110 = tpu.memref_squeeze %109 : memref<1x!tpu.dma_semaphore, #tpu.memory_space<semaphore_mem>> -> memref<!tpu.dma_semaphore, #tpu.memory_space<semaphore_mem>>
    tpu.wait_dma2 semaphore(%110 : memref<!tpu.dma_semaphore, #tpu.memory_space<semaphore_mem>>) src(%106 : memref<1x128xf32, #tpu.memory_space<any>>) dst(%108 : memref<1x128xf32, #tpu.memory_space<vmem>>)
    %c0_i32_70 = arith.constant 0 : i32
    %c0_i32_71 = arith.constant 0 : i32
    %111 = tpu.memref_slice %arg3[%c0_i32_70, %c0_i32_71] : memref<256x128xf32, #tpu.memory_space<any>> -> memref<1x128xf32, #tpu.memory_space<any>>
    %c5_i32_72 = arith.constant 5 : i32
    %c0_i32_73 = arith.constant 0 : i32
    %112 = tpu.memref_slice %arg6[%85, %c5_i32_72, %c0_i32_73] : memref<5x8x128xf32, #tpu.memory_space<vmem>> -> memref<1x1x128xf32, #tpu.memory_space<vmem>>
    %113 = tpu.memref_squeeze %112 : memref<1x1x128xf32, #tpu.memory_space<vmem>> -> memref<1x128xf32, #tpu.memory_space<vmem>>
    %114 = tpu.memref_slice %arg7[%85] : memref<5x!tpu.dma_semaphore, #tpu.memory_space<semaphore_mem>> -> memref<1x!tpu.dma_semaphore, #tpu.memory_space<semaphore_mem>>
    %115 = tpu.memref_squeeze %114 : memref<1x!tpu.dma_semaphore, #tpu.memory_space<semaphore_mem>> -> memref<!tpu.dma_semaphore, #tpu.memory_space<semaphore_mem>>
    tpu.wait_dma2 semaphore(%115 : memref<!tpu.dma_semaphore, #tpu.memory_space<semaphore_mem>>) src(%111 : memref<1x128xf32, #tpu.memory_space<any>>) dst(%113 : memref<1x128xf32, #tpu.memory_space<vmem>>)
    %c0_i32_74 = arith.constant 0 : i32
    %c0_i32_75 = arith.constant 0 : i32
    %116 = tpu.memref_slice %arg3[%c0_i32_74, %c0_i32_75] : memref<256x128xf32, #tpu.memory_space<any>> -> memref<1x128xf32, #tpu.memory_space<any>>
    %c6_i32_76 = arith.constant 6 : i32
    %c0_i32_77 = arith.constant 0 : i32
    %117 = tpu.memref_slice %arg6[%85, %c6_i32_76, %c0_i32_77] : memref<5x8x128xf32, #tpu.memory_space<vmem>> -> memref<1x1x128xf32, #tpu.memory_space<vmem>>
    %118 = tpu.memref_squeeze %117 : memref<1x1x128xf32, #tpu.memory_space<vmem>> -> memref<1x128xf32, #tpu.memory_space<vmem>>
    %119 = tpu.memref_slice %arg7[%85] : memref<5x!tpu.dma_semaphore, #tpu.memory_space<semaphore_mem>> -> memref<1x!tpu.dma_semaphore, #tpu.memory_space<semaphore_mem>>
    %120 = tpu.memref_squeeze %119 : memref<1x!tpu.dma_semaphore, #tpu.memory_space<semaphore_mem>> -> memref<!tpu.dma_semaphore, #tpu.memory_space<semaphore_mem>>
    tpu.wait_dma2 semaphore(%120 : memref<!tpu.dma_semaphore, #tpu.memory_space<semaphore_mem>>) src(%116 : memref<1x128xf32, #tpu.memory_space<any>>) dst(%118 : memref<1x128xf32, #tpu.memory_space<vmem>>)
    %c0_i32_78 = arith.constant 0 : i32
    %c0_i32_79 = arith.constant 0 : i32
    %121 = tpu.memref_slice %arg3[%c0_i32_78, %c0_i32_79] : memref<256x128xf32, #tpu.memory_space<any>> -> memref<1x128xf32, #tpu.memory_space<any>>
    %c7_i32_80 = arith.constant 7 : i32
    %c0_i32_81 = arith.constant 0 : i32
    %122 = tpu.memref_slice %arg6[%85, %c7_i32_80, %c0_i32_81] : memref<5x8x128xf32, #tpu.memory_space<vmem>> -> memref<1x1x128xf32, #tpu.memory_space<vmem>>
    %123 = tpu.memref_squeeze %122 : memref<1x1x128xf32, #tpu.memory_space<vmem>> -> memref<1x128xf32, #tpu.memory_space<vmem>>
    %124 = tpu.memref_slice %arg7[%85] : memref<5x!tpu.dma_semaphore, #tpu.memory_space<semaphore_mem>> -> memref<1x!tpu.dma_semaphore, #tpu.memory_space<semaphore_mem>>
    %125 = tpu.memref_squeeze %124 : memref<1x!tpu.dma_semaphore, #tpu.memory_space<semaphore_mem>> -> memref<!tpu.dma_semaphore, #tpu.memory_space<semaphore_mem>>
    tpu.wait_dma2 semaphore(%125 : memref<!tpu.dma_semaphore, #tpu.memory_space<semaphore_mem>>) src(%121 : memref<1x128xf32, #tpu.memory_space<any>>) dst(%123 : memref<1x128xf32, #tpu.memory_space<vmem>>)
    %c4_i32_82 = arith.constant 4 : i32
    %126 = arith.addi %75, %c4_i32_82 : i32
    %c1_i32_83 = arith.constant 1 : i32
    %127 = arith.cmpi slt, %126, %c1_i32_83 : i32
    %128 = arith.extui %127 : i1 to i32
    %c0_i32_84 = arith.constant 0 : i32
    %129 = arith.cmpi ne, %128, %c0_i32_84 : i32
    scf.if %129 {
      %c4_i32_91 = arith.constant 4 : i32
      %142 = arith.addi %75, %c4_i32_91 : i32
      %c4_i32_92 = arith.constant 4 : i32
      %143 = arith.addi %75, %c4_i32_92 : i32
      %c5_i32_93 = arith.constant 5 : i32
      %c0_i32_94 = arith.constant 0 : i32
      %144 = arith.cmpi eq, %c5_i32_93, %c0_i32_94 : i32
      %c1_i32_95 = arith.constant 1 : i32
      %145 = arith.select %144, %c1_i32_95, %c5_i32_93 : i32
      %146 = arith.remsi %143, %145 : i32
      %c0_i32_96 = arith.constant 0 : i32
      %147 = arith.cmpi ne, %146, %c0_i32_96 : i32
      %c0_i32_97 = arith.constant 0 : i32
      %148 = arith.cmpi slt, %146, %c0_i32_97 : i32
      %c0_i32_98 = arith.constant 0 : i32
      %149 = arith.cmpi slt, %145, %c0_i32_98 : i32
      %150 = arith.xori %148, %149 : i1
      %151 = arith.andi %150, %147 : i1
      %152 = arith.addi %146, %145 : i32
      %153 = arith.select %151, %152, %146 : i32
      %c8_i32_99 = arith.constant 8 : i32
      %154 = arith.muli %142, %c8_i32_99 : i32
      %155 = arith.addi %0, %154 : i32
      %c0_i32_100 = arith.constant 0 : i32
      %156 = arith.addi %155, %c0_i32_100 : i32
      %157 = arith.index_cast %arg1 : i32 to index
      %158 = arith.index_cast %156 : i32 to index
      %159 = memref.load %arg2[%157, %158] : memref<2x8xi32, #tpu.memory_space<smem>>
      %c0_i32_101 = arith.constant 0 : i32
      %160 = tpu.memref_slice %arg3[%159, %c0_i32_101] : memref<256x128xf32, #tpu.memory_space<any>> -> memref<1x128xf32, #tpu.memory_space<any>>
      %c0_i32_102 = arith.constant 0 : i32
      %c0_i32_103 = arith.constant 0 : i32
      %161 = tpu.memref_slice %arg6[%153, %c0_i32_102, %c0_i32_103] : memref<5x8x128xf32, #tpu.memory_space<vmem>> -> memref<1x1x128xf32, #tpu.memory_space<vmem>>
      %162 = tpu.memref_squeeze %161 : memref<1x1x128xf32, #tpu.memory_space<vmem>> -> memref<1x128xf32, #tpu.memory_space<vmem>>
      %163 = tpu.memref_slice %arg7[%153] : memref<5x!tpu.dma_semaphore, #tpu.memory_space<semaphore_mem>> -> memref<1x!tpu.dma_semaphore, #tpu.memory_space<semaphore_mem>>
      %164 = tpu.memref_squeeze %163 : memref<1x!tpu.dma_semaphore, #tpu.memory_space<semaphore_mem>> -> memref<!tpu.dma_semaphore, #tpu.memory_space<semaphore_mem>>
      tpu.enqueue_dma source(%160 : memref<1x128xf32, #tpu.memory_space<any>>) target(%162 : memref<1x128xf32, #tpu.memory_space<vmem>>) target_semaphore(%164 : memref<!tpu.dma_semaphore, #tpu.memory_space<semaphore_mem>>)
      %c1_i32_104 = arith.constant 1 : i32
      %165 = arith.addi %155, %c1_i32_104 : i32
      %166 = arith.index_cast %arg1 : i32 to index
      %167 = arith.index_cast %165 : i32 to index
      %168 = memref.load %arg2[%166, %167] : memref<2x8xi32, #tpu.memory_space<smem>>
      %c0_i32_105 = arith.constant 0 : i32
      %169 = tpu.memref_slice %arg3[%168, %c0_i32_105] : memref<256x128xf32, #tpu.memory_space<any>> -> memref<1x128xf32, #tpu.memory_space<any>>
      %c1_i32_106 = arith.constant 1 : i32
      %c0_i32_107 = arith.constant 0 : i32
      %170 = tpu.memref_slice %arg6[%153, %c1_i32_106, %c0_i32_107] : memref<5x8x128xf32, #tpu.memory_space<vmem>> -> memref<1x1x128xf32, #tpu.memory_space<vmem>>
      %171 = tpu.memref_squeeze %170 : memref<1x1x128xf32, #tpu.memory_space<vmem>> -> memref<1x128xf32, #tpu.memory_space<vmem>>
      %172 = tpu.memref_slice %arg7[%153] : memref<5x!tpu.dma_semaphore, #tpu.memory_space<semaphore_mem>> -> memref<1x!tpu.dma_semaphore, #tpu.memory_space<semaphore_mem>>
      %173 = tpu.memref_squeeze %172 : memref<1x!tpu.dma_semaphore, #tpu.memory_space<semaphore_mem>> -> memref<!tpu.dma_semaphore, #tpu.memory_space<semaphore_mem>>
      tpu.enqueue_dma source(%169 : memref<1x128xf32, #tpu.memory_space<any>>) target(%171 : memref<1x128xf32, #tpu.memory_space<vmem>>) target_semaphore(%173 : memref<!tpu.dma_semaphore, #tpu.memory_space<semaphore_mem>>)
      %c2_i32_108 = arith.constant 2 : i32
      %174 = arith.addi %155, %c2_i32_108 : i32
      %175 = arith.index_cast %arg1 : i32 to index
      %176 = arith.index_cast %174 : i32 to index
      %177 = memref.load %arg2[%175, %176] : memref<2x8xi32, #tpu.memory_space<smem>>
      %c0_i32_109 = arith.constant 0 : i32
      %178 = tpu.memref_slice %arg3[%177, %c0_i32_109] : memref<256x128xf32, #tpu.memory_space<any>> -> memref<1x128xf32, #tpu.memory_space<any>>
      %c2_i32_110 = arith.constant 2 : i32
      %c0_i32_111 = arith.constant 0 : i32
      %179 = tpu.memref_slice %arg6[%153, %c2_i32_110, %c0_i32_111] : memref<5x8x128xf32, #tpu.memory_space<vmem>> -> memref<1x1x128xf32, #tpu.memory_space<vmem>>
      %180 = tpu.memref_squeeze %179 : memref<1x1x128xf32, #tpu.memory_space<vmem>> -> memref<1x128xf32, #tpu.memory_space<vmem>>
      %181 = tpu.memref_slice %arg7[%153] : memref<5x!tpu.dma_semaphore, #tpu.memory_space<semaphore_mem>> -> memref<1x!tpu.dma_semaphore, #tpu.memory_space<semaphore_mem>>
      %182 = tpu.memref_squeeze %181 : memref<1x!tpu.dma_semaphore, #tpu.memory_space<semaphore_mem>> -> memref<!tpu.dma_semaphore, #tpu.memory_space<semaphore_mem>>
      tpu.enqueue_dma source(%178 : memref<1x128xf32, #tpu.memory_space<any>>) target(%180 : memref<1x128xf32, #tpu.memory_space<vmem>>) target_semaphore(%182 : memref<!tpu.dma_semaphore, #tpu.memory_space<semaphore_mem>>)
      %c3_i32_112 = arith.constant 3 : i32
      %183 = arith.addi %155, %c3_i32_112 : i32
      %184 = arith.index_cast %arg1 : i32 to index
      %185 = arith.index_cast %183 : i32 to index
      %186 = memref.load %arg2[%184, %185] : memref<2x8xi32, #tpu.memory_space<smem>>
      %c0_i32_113 = arith.constant 0 : i32
      %187 = tpu.memref_slice %arg3[%186, %c0_i32_113] : memref<256x128xf32, #tpu.memory_space<any>> -> memref<1x128xf32, #tpu.memory_space<any>>
      %c3_i32_114 = arith.constant 3 : i32
      %c0_i32_115 = arith.constant 0 : i32
      %188 = tpu.memref_slice %arg6[%153, %c3_i32_114, %c0_i32_115] : memref<5x8x128xf32, #tpu.memory_space<vmem>> -> memref<1x1x128xf32, #tpu.memory_space<vmem>>
      %189 = tpu.memref_squeeze %188 : memref<1x1x128xf32, #tpu.memory_space<vmem>> -> memref<1x128xf32, #tpu.memory_space<vmem>>
      %190 = tpu.memref_slice %arg7[%153] : memref<5x!tpu.dma_semaphore, #tpu.memory_space<semaphore_mem>> -> memref<1x!tpu.dma_semaphore, #tpu.memory_space<semaphore_mem>>
      %191 = tpu.memref_squeeze %190 : memref<1x!tpu.dma_semaphore, #tpu.memory_space<semaphore_mem>> -> memref<!tpu.dma_semaphore, #tpu.memory_space<semaphore_mem>>
      tpu.enqueue_dma source(%187 : memref<1x128xf32, #tpu.memory_space<any>>) target(%189 : memref<1x128xf32, #tpu.memory_space<vmem>>) target_semaphore(%191 : memref<!tpu.dma_semaphore, #tpu.memory_space<semaphore_mem>>)
      %c4_i32_116 = arith.constant 4 : i32
      %192 = arith.addi %155, %c4_i32_116 : i32
      %193 = arith.index_cast %arg1 : i32 to index
      %194 = arith.index_cast %192 : i32 to index
      %195 = memref.load %arg2[%193, %194] : memref<2x8xi32, #tpu.memory_space<smem>>
      %c0_i32_117 = arith.constant 0 : i32
      %196 = tpu.memref_slice %arg3[%195, %c0_i32_117] : memref<256x128xf32, #tpu.memory_space<any>> -> memref<1x128xf32, #tpu.memory_space<any>>
      %c4_i32_118 = arith.constant 4 : i32
      %c0_i32_119 = arith.constant 0 : i32
      %197 = tpu.memref_slice %arg6[%153, %c4_i32_118, %c0_i32_119] : memref<5x8x128xf32, #tpu.memory_space<vmem>> -> memref<1x1x128xf32, #tpu.memory_space<vmem>>
      %198 = tpu.memref_squeeze %197 : memref<1x1x128xf32, #tpu.memory_space<vmem>> -> memref<1x128xf32, #tpu.memory_space<vmem>>
      %199 = tpu.memref_slice %arg7[%153] : memref<5x!tpu.dma_semaphore, #tpu.memory_space<semaphore_mem>> -> memref<1x!tpu.dma_semaphore, #tpu.memory_space<semaphore_mem>>
      %200 = tpu.memref_squeeze %199 : memref<1x!tpu.dma_semaphore, #tpu.memory_space<semaphore_mem>> -> memref<!tpu.dma_semaphore, #tpu.memory_space<semaphore_mem>>
      tpu.enqueue_dma source(%196 : memref<1x128xf32, #tpu.memory_space<any>>) target(%198 : memref<1x128xf32, #tpu.memory_space<vmem>>) target_semaphore(%200 : memref<!tpu.dma_semaphore, #tpu.memory_space<semaphore_mem>>)
      %c5_i32_120 = arith.constant 5 : i32
      %201 = arith.addi %155, %c5_i32_120 : i32
      %202 = arith.index_cast %arg1 : i32 to index
      %203 = arith.index_cast %201 : i32 to index
      %204 = memref.load %arg2[%202, %203] : memref<2x8xi32, #tpu.memory_space<smem>>
      %c0_i32_121 = arith.constant 0 : i32
      %205 = tpu.memref_slice %arg3[%204, %c0_i32_121] : memref<256x128xf32, #tpu.memory_space<any>> -> memref<1x128xf32, #tpu.memory_space<any>>
      %c5_i32_122 = arith.constant 5 : i32
      %c0_i32_123 = arith.constant 0 : i32
      %206 = tpu.memref_slice %arg6[%153, %c5_i32_122, %c0_i32_123] : memref<5x8x128xf32, #tpu.memory_space<vmem>> -> memref<1x1x128xf32, #tpu.memory_space<vmem>>
      %207 = tpu.memref_squeeze %206 : memref<1x1x128xf32, #tpu.memory_space<vmem>> -> memref<1x128xf32, #tpu.memory_space<vmem>>
      %208 = tpu.memref_slice %arg7[%153] : memref<5x!tpu.dma_semaphore, #tpu.memory_space<semaphore_mem>> -> memref<1x!tpu.dma_semaphore, #tpu.memory_space<semaphore_mem>>
      %209 = tpu.memref_squeeze %208 : memref<1x!tpu.dma_semaphore, #tpu.memory_space<semaphore_mem>> -> memref<!tpu.dma_semaphore, #tpu.memory_space<semaphore_mem>>
      tpu.enqueue_dma source(%205 : memref<1x128xf32, #tpu.memory_space<any>>) target(%207 : memref<1x128xf32, #tpu.memory_space<vmem>>) target_semaphore(%209 : memref<!tpu.dma_semaphore, #tpu.memory_space<semaphore_mem>>)
      %c6_i32_124 = arith.constant 6 : i32
      %210 = arith.addi %155, %c6_i32_124 : i32
      %211 = arith.index_cast %arg1 : i32 to index
      %212 = arith.index_cast %210 : i32 to index
      %213 = memref.load %arg2[%211, %212] : memref<2x8xi32, #tpu.memory_space<smem>>
      %c0_i32_125 = arith.constant 0 : i32
      %214 = tpu.memref_slice %arg3[%213, %c0_i32_125] : memref<256x128xf32, #tpu.memory_space<any>> -> memref<1x128xf32, #tpu.memory_space<any>>
      %c6_i32_126 = arith.constant 6 : i32
      %c0_i32_127 = arith.constant 0 : i32
      %215 = tpu.memref_slice %arg6[%153, %c6_i32_126, %c0_i32_127] : memref<5x8x128xf32, #tpu.memory_space<vmem>> -> memref<1x1x128xf32, #tpu.memory_space<vmem>>
      %216 = tpu.memref_squeeze %215 : memref<1x1x128xf32, #tpu.memory_space<vmem>> -> memref<1x128xf32, #tpu.memory_space<vmem>>
      %217 = tpu.memref_slice %arg7[%153] : memref<5x!tpu.dma_semaphore, #tpu.memory_space<semaphore_mem>> -> memref<1x!tpu.dma_semaphore, #tpu.memory_space<semaphore_mem>>
      %218 = tpu.memref_squeeze %217 : memref<1x!tpu.dma_semaphore, #tpu.memory_space<semaphore_mem>> -> memref<!tpu.dma_semaphore, #tpu.memory_space<semaphore_mem>>
      tpu.enqueue_dma source(%214 : memref<1x128xf32, #tpu.memory_space<any>>) target(%216 : memref<1x128xf32, #tpu.memory_space<vmem>>) target_semaphore(%218 : memref<!tpu.dma_semaphore, #tpu.memory_space<semaphore_mem>>)
      %c7_i32_128 = arith.constant 7 : i32
      %219 = arith.addi %155, %c7_i32_128 : i32
      %220 = arith.index_cast %arg1 : i32 to index
      %221 = arith.index_cast %219 : i32 to index
      %222 = memref.load %arg2[%220, %221] : memref<2x8xi32, #tpu.memory_space<smem>>
      %c0_i32_129 = arith.constant 0 : i32
      %223 = tpu.memref_slice %arg3[%222, %c0_i32_129] : memref<256x128xf32, #tpu.memory_space<any>> -> memref<1x128xf32, #tpu.memory_space<any>>
      %c7_i32_130 = arith.constant 7 : i32
      %c0_i32_131 = arith.constant 0 : i32
      %224 = tpu.memref_slice %arg6[%153, %c7_i32_130, %c0_i32_131] : memref<5x8x128xf32, #tpu.memory_space<vmem>> -> memref<1x1x128xf32, #tpu.memory_space<vmem>>
      %225 = tpu.memref_squeeze %224 : memref<1x1x128xf32, #tpu.memory_space<vmem>> -> memref<1x128xf32, #tpu.memory_space<vmem>>
      %226 = tpu.memref_slice %arg7[%153] : memref<5x!tpu.dma_semaphore, #tpu.memory_space<semaphore_mem>> -> memref<1x!tpu.dma_semaphore, #tpu.memory_space<semaphore_mem>>
      %227 = tpu.memref_squeeze %226 : memref<1x!tpu.dma_semaphore, #tpu.memory_space<semaphore_mem>> -> memref<!tpu.dma_semaphore, #tpu.memory_space<semaphore_mem>>
      tpu.enqueue_dma source(%223 : memref<1x128xf32, #tpu.memory_space<any>>) target(%225 : memref<1x128xf32, #tpu.memory_space<vmem>>) target_semaphore(%227 : memref<!tpu.dma_semaphore, #tpu.memory_space<semaphore_mem>>)
    } else {
    }
    %c8_i32_85 = arith.constant 8 : i32
    %130 = arith.muli %75, %c8_i32_85 : i32
    %131 = tpu.assume_multiple %130, 8 : i32
    %132 = arith.index_cast %85 : i32 to index
    %c0 = arith.constant 0 : index
    %c0_86 = arith.constant 0 : index
    %133 = vector.load %arg6[%132, %c0, %c0_86] : memref<5x8x128xf32, #tpu.memory_space<vmem>>, vector<1x8x128xf32>
    %134 = vector.shape_cast %133 : vector<1x8x128xf32> to vector<8x128xf32>
    %135 = arith.index_cast %131 : i32 to index
    %c0_87 = arith.constant 0 : index
    %136 = vector.load %arg4[%135, %c0_87] : memref<8x128xf32, #tpu.memory_space<vmem>>, vector<8x128xf32>
    %137 = arith.addf %134, %136 : vector<8x128xf32>
    %c0_88 = arith.constant 0 : index
    %138 = arith.index_cast %131 : i32 to index
    %c0_89 = arith.constant 0 : index
    %139 = vector.load %arg5[%c0_88, %138, %c0_89] : memref<1x8x128xf32, #tpu.memory_space<vmem>>, vector<1x8x128xf32>
    %140 = vector.shape_cast %139 : vector<1x8x128xf32> to vector<8x128xf32>
    %141 = vector.shape_cast %137 : vector<8x128xf32> to vector<1x8x128xf32>
    tpu.vector_store %arg5[%c0_88, %138, %c0_89], %141 {strides = array<i32>} : memref<1x8x128xf32, #tpu.memory_space<vmem>>, vector<1x8x128xf32>,
    %c1_i32_90 = arith.constant 1 : i32
    return
  }
  func.func @transform_1(%arg0: i32, %arg1: i32, %arg2: memref<2x8xi32, #tpu.memory_space<smem>>) -> (i32, i32) {
    %c0_i32 = arith.constant 0 : i32
    %c0_i32_0 = arith.constant 0 : i32
    return %arg0, %c0_i32 : i32, i32
  }
  func.func @transform_2(%arg0: i32, %arg1: i32, %arg2: memref<2x8xi32, #tpu.memory_space<smem>>) -> (i32, i32, i32) {
    %c0_i32 = arith.constant 0 : i32
    %c0_i32_0 = arith.constant 0 : i32
    return %arg1, %arg0, %c0_i32 : i32, i32, i32
  }
}

</mosaic_0001>

<bundles_post_ra>
// kernel: tpu_custom_call.1
= control target key start
LH: loop header
LB: loop body
LE: loop exit
PB: predicated region body
PF: predicated region fallthrough
CT: control target
= control target key end

     0   :  { %s1221_s0 = inlined_call_operand.hbm [shape: s32[2,8], index: 0, kind: input, shape index: {}]   ;;  %s1222_s1 = inlined_call_operand.hbm [shape: f32[256,128], index: 1, kind: input, shape index: {}]   ;;  %s1223_s2 = inlined_call_operand.hbm [shape: f32[8,128], index: 2, kind: input, shape index: {}]   ;;  %s1224_s3 = inlined_call_operand.hbm [shape: f32[2,8,128], index: 3, kind: output, shape index: {}]  }
   0x1   :  { %1231 = sst [smem:[#allocation33_spill]] %s1223_s2  ;;  %s581_s14 = scalar_lea.hbm %s1221_s0, 32 }
   0x2   :  { %p582_p0 = scmp.ne.s32.totalorder %s1221_s0, %s581_s14  ;;  %p585_p1 = scmp.lt.u32.totalorder %s581_s14, %s1221_s0 }
   0x4   :  { %p587_p2 = pnand %p585_p1, %p582_p0 }
   0x6   :  { %590 = shalt.err (!%p587_p2)  }
   0x7   :  { %s899_s19 = smov [#allocation5]  }
   0x8   :  { %9 = dma.hbm_to_smem %s1221_s0, 32, %s899_s19, [#allocation4] }
   0x9   :  { %863 = dma.done.wait [#allocation4], 32 }
   0xa   :  { %864 = vsyncadd [#allocation4], 4294967264 }
   0xb   :  { %11 = sfence }
   0xc   :  { %12 = vsyncpa [#allocation7], 0 }
   0xd   :  { %13 = vsyncpa [#allocation8], 0 }
   0xe   :  { %15 = vsyncpa [#allocation8 + $0x1], 0  ;;  %s942_s22 = smov 0   ;;  %s944_s23 = smov 0  }
   0xf   :  { %s946_s24 = smov 0   ;;  %s948_s25 = smov 0  }
  0x10   :  { %s950_s26 = smov 0   ;;  %s952_s27 = smov 0  }
  0x11 LB: > { %s474_s0 = sadd.s32 4294967295, %s897_s27   ;;  %s475_s28 = sadd.s32 4294967294, %s897_s27   ;;  %s897_s27 = sphi %s952_s27, %s21_s27   ;;  %s893_s26 = sphi %s950_s26, %s1249_s26   ;;  %s889_s25 = sphi %s948_s25, %s1248_s25   ;;  %s885_s24 = sphi %s946_s24, %s1247_s24   ;;  %s881_s23 = sphi %s944_s23, %s1246_s23   ;;  %s877_s22 = sphi %s942_s22, %s1245_s22  }
  0x12   : > { %s30_s29 = sadd.s32 1, %s893_s26  ;;  %s68_s30 = sadd.s32 1, %s885_s24 }
  0x13   : > { %p31_p3 = scmp.ge.s32.totalorder %s30_s29, 2  ;;  %p78_p4 = scmp.ne.s32.totalorder %s885_s24, %s881_s23 }
  0x14   : > { %p79_p5 = scmp.eq.s32.totalorder %s474_s0, 1  ;;  %p84_p6 = scmp.ne.s32.totalorder %s881_s23, %s877_s22 }
  0x15   : > { %s1251_s29 = smov (%p31_p3, %s30_s29), 0  ;;  %p85_p8 = scmp.eq.s32.totalorder %s475_s28, 1 }
  0x16   : > { %1232 = sst [smem:[#allocation32_spill]] %s1251_s29  ;;  %p982_p7 = por %p79_p5, %p78_p4 }
  0x17   : > { %s63_s5 = ssub.s32 %s893_s26, %s1251_s29  ;;  %p476_p9 = scmp.ge.s32.totalorder %s897_s27, 1 }
  0x18   : > { %s1233_s4 = scalar_select %p982_p7, 1, 0 }
  0x19   : > { %p66_p10 = scmp.eq.s32.totalorder %s63_s5, 0  ;;  %p989_p11 = por %p85_p8, %p84_p6 }
  0x1a   : > { %p92_p12 = scmp.lt.s32.totalorder %s897_s27, 3  ;;  %p1001_p0 = scmp.eq.s32.totalorder %s474_s0, 0 }
  0x1b   : > { %s1234_s6 = scalar_select %p989_p11, 1, 0 }
  0x1c   : > { %s995_s7 = scalar_select %p66_p10, %s885_s24, %s68_s30  }
  0x1d   : > { %p997_p13 = pnand %p476_p9, %p92_p12  ;;  %s900_s10 = smov [#allocation6]  }
  0x1e   : > { %s1236_s9 = scalar_select %p1001_p0, 1, 0 }
  0x1f   : > { %s1235_s8 = scalar_select %p997_p13, 1, 0 }
  0x20   : > { %p512_p1 = pneg %p997_p13  ;;  %s107_s11 = sshll.u32 %s900_s10, 4  ;;  %s108_s11 = int_to_ptr.vmem [resolvable:$true] %s107_s11 }
  0x21   : > { %s1238_s2 = sld [smem:[#allocation33_spill]] }
  0x22   : > { %p1009_p2 = pnand %p1001_p0, %p512_p1 }
  0x24   : > { %p593_p4 = pneg %p1009_p2 }
  0x27   : > { %s591_s15 = scalar_lea.hbm %s1238_s2, 128 }
  0x28   : > { %p592_p3 = scmp.ne.s32.totalorder %s1238_s2, %s591_s15  ;;  %p598_p8 = scmp.lt.u32.totalorder %s591_s15, %s1238_s2 }
  0x2a   : > { %p594_p5 = pnand %p593_p4, %p592_p3 }
  0x2c   : > { %p595_p6 = pneg %p594_p5 }
  0x2e   : > { %p600_p9 = pnand %p598_p8, %p595_p6 }
  0x30   : > { %603 = shalt.err (!%p600_p9)
}
  0x31   : > { %s604_s20 = scalar_lea.vmem %s108_s11, 128  ;;  %p612_p11 = scmp.lt.s32.totalorder %s108_s11, %s108_s11 }
  0x32   : > { %p605_p10 = scmp.ne.s32.totalorder %s108_s11, %s604_s20  ;;  %p613_p7 = scmp.lt.s32.totalorder %s604_s20, %s604_s20 }
  0x34   : > { %p607_p12 = pnand %p605_p10, %p593_p4  ;;  %p614_p0 = por %p613_p7, %p612_p11 }
  0x36   : > { %p608_p1 = pneg %p607_p12 }
  0x38   : > { %p615_p13 = pnand %p614_p0, %p608_p1 }
  0x3a   : > { %618 = shalt.err (!%p615_p13)
}
  0x3b   : > { %515 = dma.hbm_to_vmem [thread:$0]  (!%p1009_p2), %s1238_s2, 128, %s108_s11, [#allocation7]  }
  0x3c   : > { %p1239_p3 = scmp.ne.s32.totalorder %s1235_s8, 0 }
  0x3d   : > { %p1240_p5 = scmp.ne.s32.totalorder (!%p1239_p3), %s1236_s9, 0 }
  0x3e   : > { %120 = sbr.rel (%p1239_p3) target bundleno = 278 (0x116), region = 24 }
  0x45   : > { %866 = dma.done.wait (%p1240_p5), [#allocation7], 128  }
  0x46   : > { %868 = vsyncadd (%p1240_p5), [#allocation7], 4294967168  ;;  %s1229_s28 = sand.u32 1, %s881_s23   ;;  %s1037_s30 = sshll.u32 %s889_s25, 7 }
  0x47   : > { %s1041_s5 = sshll.u32 %s1229_s28, 3  ;;  %s143_s8 = sld [smem:[#allocation5 + %s1037_s30]] }
  0x48   : > { %s901_s10 = smov [#allocation2]   ;;  %s164_s12 = sadd.s32 1, %s1037_s30 }
  0x49   : > { %s153_s11 = sshll.u32 %s901_s10, 4  ;;  %s1047_s9 = sld [smem:[#allocation5 + %s164_s12]]  ;;  %s1045_s11 = int_to_ptr.vmem [resolvable:$true] %s153_s11 }
  0x4a   : > { %s187_s13 = sadd.s32 2, %s1037_s30  ;;  %s902_s14 = smov [#allocation2 + $0x1]  }
  0x4b   : > { %s176_s15 = sshll.u32 %s902_s14, 4  ;;  %s1050_s16 = sld [smem:[#allocation5 + %s187_s13]]  ;;  %s1052_s15 = int_to_ptr.vmem [resolvable:$true] %s176_s15 }
  0x4c   : > { %s1060_s10 = scalar_lea.hbm %s1222_s1, 4096 }
  0x4d   : > { %s482_s25 = sshll.u32 %s143_s8, 4 }
  0x4e   : > { %s145_s19 = scalar_lea.hbm %s1222_s1, %s482_s25 }
  0x4f   : > { %s619_s20 = scalar_lea.hbm %s145_s19, 16  ;;  %p622_p11 = scmp.lt.u32.totalorder %s145_s19, %s1222_s1 }
  0x50   : > { %p620_p7 = scmp.ne.s32.totalorder %s145_s19, %s619_s20  ;;  %p623_p13 = scmp.lt.u32.totalorder %s1060_s10, %s619_s20 }
  0x51   : > { %p625_p2 = scmp.lt.u32.totalorder %s619_s20, %s145_s19 }
  0x52   : > { %p624_p0 = por %p623_p13, %p622_p11 }
  0x54   : > { %p626_p4 = por %p625_p2, %p624_p0 }
  0x56   : > { %p627_p6 = pnand %p626_p4, %p620_p7 }
  0x58   : > { %630 = shalt.err (!%p627_p6)  }
  0x59   : > { %s631_s8 = scalar_lea.vmem %s1045_s11, 16  ;;  %s1069_s13 = scalar_lea.vmem %s1045_s11, 640 }
  0x5a   : > { %p632_p8 = scmp.ne.s32.totalorder %s1045_s11, %s631_s8  ;;  %p636_p9 = scmp.lt.s32.totalorder %s1045_s11, %s1045_s11 }
  0x5b   : > { %p637_p10 = scmp.lt.s32.totalorder %s1069_s13, %s631_s8 }
  0x5d   : > { %p638_p12 = por %p637_p10, %p636_p9 }
  0x5f   : > { %p639_p1 = pnand %p638_p12, %p632_p8 }
  0x61   : > { %642 = shalt.err (!%p639_p1)  }
  0x62   : > { %156 = dma.hbm_to_vmem [thread:$0]  %s145_s19, 16, %s1045_s11, [#allocation3] }
  0x63   : > { %s484_s28 = sshll.u32 %s1047_s9, 4  ;;  %s903_s14 = smov [#allocation2 + $0x2]  }
  0x64   : > { %s199_s25 = sshll.u32 %s903_s14, 4  ;;  %s167_s20 = scalar_lea.hbm %s1222_s1, %s484_s28  ;;  %s1079_s25 = int_to_ptr.vmem [resolvable:$true] %s199_s25 }
  0x65   : > { %s643_s21 = scalar_lea.hbm %s167_s20, 16  ;;  %p646_p5 = scmp.lt.u32.totalorder %s167_s20, %s1222_s1 }
  0x66   : > { %p644_p3 = scmp.ne.s32.totalorder %s167_s20, %s643_s21  ;;  %p647_p7 = scmp.lt.u32.totalorder %s1060_s10, %s643_s21 }
  0x67   : > { %p649_p13 = scmp.lt.u32.totalorder %s643_s21, %s167_s20 }
  0x68   : > { %p648_p11 = por %p647_p7, %p646_p5 }
  0x6a   : > { %p650_p0 = por %p649_p13, %p648_p11 }
  0x6c   : > { %p651_p2 = pnand %p650_p0, %p644_p3 }
  0x6e   : > { %654 = shalt.err (!%p651_p2)  }
  0x6f   : > { %s655_s9 = scalar_lea.vmem %s1052_s15, 16  ;;  %p660_p6 = scmp.lt.s32.totalorder %s1052_s15, %s1045_s11 }
  0x70   : > { %p656_p4 = scmp.ne.s32.totalorder %s1052_s15, %s655_s9  ;;  %p661_p8 = scmp.lt.s32.totalorder %s1069_s13, %s655_s9 }
  0x72   : > { %p662_p9 = por %p661_p8, %p660_p6 }
  0x74   : > { %p663_p10 = pnand %p662_p9, %p656_p4 }
  0x76   : > { %666 = shalt.err (!%p663_p10)  }
  0x77   : > { %179 = dma.hbm_to_vmem [thread:$0]  %s167_s20, 16, %s1052_s15, [#allocation3] }
  0x78   : > { %s486_s19 = sshll.u32 %s1050_s16, 4  ;;  %s210_s8 = sadd.s32 3, %s1037_s30 }
  0x79   : > { %s190_s17 = scalar_lea.hbm %s1222_s1, %s486_s19  ;;  %s1096_s18 = sld [smem:[#allocation5 + %s210_s8]] }
  0x7a   : > { %s667_s21 = scalar_lea.hbm %s190_s17, 16  ;;  %p670_p1 = scmp.lt.u32.totalorder %s190_s17, %s1222_s1 }
  0x7b   : > { %p668_p12 = scmp.ne.s32.totalorder %s190_s17, %s667_s21  ;;  %p671_p3 = scmp.lt.u32.totalorder %s1060_s10, %s667_s21 }
  0x7c   : > { %p673_p7 = scmp.lt.u32.totalorder %s667_s21, %s190_s17 }
  0x7d   : > { %p672_p5 = por %p671_p3, %p670_p1 }
  0x7f   : > { %p674_p11 = por %p673_p7, %p672_p5 }
  0x81   : > { %p675_p13 = pnand %p674_p11, %p668_p12 }
  0x83   : > { %678 = shalt.err (!%p675_p13)  }
  0x84   : > { %s679_s15 = scalar_lea.vmem %s1079_s25, 16  ;;  %p684_p2 = scmp.lt.s32.totalorder %s1079_s25, %s1045_s11 }
  0x85   : > { %p680_p0 = scmp.ne.s32.totalorder %s1079_s25, %s679_s15  ;;  %p685_p4 = scmp.lt.s32.totalorder %s1069_s13, %s679_s15 }
  0x87   : > { %p686_p6 = por %p685_p4, %p684_p2 }
  0x89   : > { %p687_p8 = pnand %p686_p6, %p680_p0 }
  0x8b   : > { %690 = shalt.err (!%p687_p8)  }
  0x8c   : > { %202 = dma.hbm_to_vmem [thread:$0]  %s190_s17, 16, %s1079_s25, [#allocation3] }
  0x8d   : > { %s233_s16 = sadd.s32 4, %s1037_s30  ;;  %s904_s20 = smov [#allocation2 + $0x3]  }
  0x8e   : > { %s222_s9 = sshll.u32 %s904_s20, 4  ;;  %s234_s19 = sld [smem:[#allocation5 + %s233_s16]]  ;;  %s223_s9 = int_to_ptr.vmem [resolvable:$true] %s222_s9 }
  0x8f   : > { %s905_s8 = smov [#allocation2 + $0x4]   ;;  %s256_s14 = sadd.s32 5, %s1037_s30 }
  0x90   : > { %s245_s28 = sshll.u32 %s905_s8, 4  ;;  %s488_s21 = sshll.u32 %s1096_s18, 4  ;;  %s1111_s28 = int_to_ptr.vmem [resolvable:$true] %s245_s28 }
  0x91   : > { %s213_s15 = scalar_lea.hbm %s1222_s1, %s488_s21  ;;  %s1116_s2 = sld [smem:[#allocation5 + %s256_s14]] }
  0x92   : > { %s691_s29 = scalar_lea.hbm %s213_s15, 16  ;;  %p694_p10 = scmp.lt.u32.totalorder %s213_s15, %s1222_s1 }
  0x93   : > { %p692_p9 = scmp.ne.s32.totalorder %s213_s15, %s691_s29  ;;  %p695_p12 = scmp.lt.u32.totalorder %s1060_s10, %s691_s29 }
  0x94   : > { %p697_p3 = scmp.lt.u32.totalorder %s691_s29, %s213_s15 }
  0x95   : > { %p696_p1 = por %p695_p12, %p694_p10 }
  0x97   : > { %p698_p5 = por %p697_p3, %p696_p1 }
  0x99   : > { %p699_p7 = pnand %p698_p5, %p692_p9 }
  0x9b   : > { %702 = shalt.err (!%p699_p7)  }
  0x9c   : > { %s703_s18 = scalar_lea.vmem %s223_s9, 16  ;;  %p708_p13 = scmp.lt.s32.totalorder %s223_s9, %s1045_s11 }
  0x9d   : > { %p704_p11 = scmp.ne.s32.totalorder %s223_s9, %s703_s18  ;;  %p709_p0 = scmp.lt.s32.totalorder %s1069_s13, %s703_s18 }
  0x9f   : > { %p710_p2 = por %p709_p0, %p708_p13 }
  0xa1   : > { %p711_p4 = pnand %p710_p2, %p704_p11 }
  0xa3   : > { %714 = shalt.err (!%p711_p4)  }
  0xa4   : > { %225 = dma.hbm_to_vmem [thread:$0]  %s213_s15, 16, %s223_s9, [#allocation3] }
  0xa5   : > { %s490_s16 = sshll.u32 %s234_s19, 4  ;;  %s906_s29 = smov [#allocation2 + $0x5]  }
  0xa6   : > { %s236_s14 = scalar_lea.hbm %s1222_s1, %s490_s16  ;;  %s268_s21 = sshll.u32 %s906_s29, 4  ;;  %s269_s21 = int_to_ptr.vmem [resolvable:$true] %s268_s21 }
  0xa7   : > { %s715_s0 = scalar_lea.hbm %s236_s14, 16  ;;  %p718_p8 = scmp.lt.u32.totalorder %s236_s14, %s1222_s1 }
  0xa8   : > { %p716_p6 = scmp.ne.s32.totalorder %s236_s14, %s715_s0  ;;  %p719_p9 = scmp.lt.u32.totalorder %s1060_s10, %s715_s0 }
  0xa9   : > { %p721_p12 = scmp.lt.u32.totalorder %s715_s0, %s236_s14 }
  0xaa   : > { %p720_p10 = por %p719_p9, %p718_p8 }
  0xac   : > { %p722_p1 = por %p721_p12, %p720_p10 }
  0xae   : > { %p723_p3 = pnand %p722_p1, %p716_p6 }
  0xb0   : > { %726 = shalt.err (!%p723_p3)  }
  0xb1   : > { %s727_s9 = scalar_lea.vmem %s1111_s28, 16  ;;  %p732_p7 = scmp.lt.s32.totalorder %s1111_s28, %s1045_s11 }
  0xb2   : > { %p728_p5 = scmp.ne.s32.totalorder %s1111_s28, %s727_s9  ;;  %p733_p11 = scmp.lt.s32.totalorder %s1069_s13, %s727_s9 }
  0xb4   : > { %p734_p13 = por %p733_p11, %p732_p7 }
  0xb6   : > { %p735_p0 = pnand %p734_p13, %p728_p5 }
  0xb8   : > { %738 = shalt.err (!%p735_p0)  }
  0xb9   : > { %248 = dma.hbm_to_vmem [thread:$0]  %s236_s14, 16, %s1111_s28, [#allocation3] }
  0xba   : > { %s279_s19 = sadd.s32 6, %s1037_s30  ;;  %s492_s15 = sshll.u32 %s1116_s2, 4 }
  0xbb   : > { %s280_s17 = sld [smem:[#allocation5 + %s279_s19]]  ;;  %s259_s20 = scalar_lea.hbm %s1222_s1, %s492_s15 }
  0xbc   : > { %s739_s8 = scalar_lea.hbm %s259_s20, 16  ;;  %p742_p4 = scmp.lt.u32.totalorder %s259_s20, %s1222_s1 }
  0xbd   : > { %p740_p2 = scmp.ne.s32.totalorder %s259_s20, %s739_s8  ;;  %p743_p6 = scmp.lt.u32.totalorder %s1060_s10, %s739_s8 }
  0xbe   : > { %p745_p9 = scmp.lt.u32.totalorder %s739_s8, %s259_s20 }
  0xbf   : > { %p744_p8 = por %p743_p6, %p742_p4 }
  0xc1   : > { %p746_p10 = por %p745_p9, %p744_p8 }
  0xc3   : > { %p747_p12 = pnand %p746_p10, %p740_p2 }
  0xc5   : > { %750 = shalt.err (!%p747_p12)  }
  0xc6   : > { %s751_s28 = scalar_lea.vmem %s269_s21, 16  ;;  %p756_p3 = scmp.lt.s32.totalorder %s269_s21, %s1045_s11 }
  0xc7   : > { %p752_p1 = scmp.ne.s32.totalorder %s269_s21, %s751_s28  ;;  %p757_p5 = scmp.lt.s32.totalorder %s1069_s13, %s751_s28 }
  0xc9   : > { %p758_p7 = por %p757_p5, %p756_p3 }
  0xcb   : > { %p759_p11 = pnand %p758_p7, %p752_p1 }
  0xcd   : > { %762 = shalt.err (!%p759_p11)  }
  0xce   : > { %271 = dma.hbm_to_vmem [thread:$0]  %s259_s20, 16, %s269_s21, [#allocation3] }
  0xcf   : > { %s907_s2 = smov [#allocation2 + $0x6]   ;;  %s302_s12 = sadd.s32 7, %s1037_s30 }
  0xd0   : > { %s291_s14 = sshll.u32 %s907_s2, 4  ;;  %s303_s25 = sld [smem:[#allocation5 + %s302_s12]]  ;;  %s292_s14 = int_to_ptr.vmem [resolvable:$true] %s291_s14 }
  0xd1   : > { %s494_s9 = sshll.u32 %s280_s17, 4  ;;  %s908_s19 = smov [#allocation2 + $0x7]  }
  0xd2   : > { %s314_s15 = sshll.u32 %s908_s19, 4  ;;  %s282_s8 = scalar_lea.hbm %s1222_s1, %s494_s9  ;;  %s315_s15 = int_to_ptr.vmem [resolvable:$true] %s314_s15 }
  0xd3   : > { %s763_s29 = scalar_lea.hbm %s282_s8, 16  ;;  %p766_p0 = scmp.lt.u32.totalorder %s282_s8, %s1222_s1 }
  0xd4   : > { %p764_p13 = scmp.ne.s32.totalorder %s282_s8, %s763_s29  ;;  %p767_p2 = scmp.lt.u32.totalorder %s1060_s10, %s763_s29 }
  0xd5   : > { %p769_p6 = scmp.lt.u32.totalorder %s763_s29, %s282_s8 }
  0xd6   : > { %p768_p4 = por %p767_p2, %p766_p0 }
  0xd8   : > { %p770_p8 = por %p769_p6, %p768_p4 }
  0xda   : > { %p771_p9 = pnand %p770_p8, %p764_p13 }
  0xdc   : > { %774 = shalt.err (!%p771_p9)  }
  0xdd   : > { %s775_s21 = scalar_lea.vmem %s292_s14, 16  ;;  %p780_p12 = scmp.lt.s32.totalorder %s292_s14, %s1045_s11 }
  0xde   : > { %p776_p10 = scmp.ne.s32.totalorder %s292_s14, %s775_s21  ;;  %p781_p1 = scmp.lt.s32.totalorder %s1069_s13, %s775_s21 }
  0xe0   : > { %p782_p3 = por %p781_p1, %p780_p12 }
  0xe2   : > { %p783_p5 = pnand %p782_p3, %p776_p10 }
  0xe4   : > { %786 = shalt.err (!%p783_p5)  }
  0xe5   : > { %294 = dma.hbm_to_vmem [thread:$0]  %s282_s8, 16, %s292_s14, [#allocation3] }
  0xe6   : > { %s496_s17 = sshll.u32 %s303_s25, 4 }
  0xe7   : > { %s305_s12 = scalar_lea.hbm %s1222_s1, %s496_s17 }
  0xe8   : > { %s787_s9 = scalar_lea.hbm %s305_s12, 16  ;;  %p790_p11 = scmp.lt.u32.totalorder %s305_s12, %s1222_s1 }
  0xe9   : > { %p788_p7 = scmp.ne.s32.totalorder %s305_s12, %s787_s9  ;;  %p791_p13 = scmp.lt.u32.totalorder %s1060_s10, %s787_s9 }
  0xea   : > { %p793_p2 = scmp.lt.u32.totalorder %s787_s9, %s305_s12 }
  0xeb   : > { %p792_p0 = por %p791_p13, %p790_p11 }
  0xed   : > { %p794_p4 = por %p793_p2, %p792_p0 }
  0xef   : > { %p795_p6 = pnand %p794_p4, %p788_p7 }
  0xf1   : > { %798 = shalt.err (!%p795_p6)  }
  0xf2   : > { %s799_s14 = scalar_lea.vmem %s315_s15, 16  ;;  %p804_p9 = scmp.lt.s32.totalorder %s315_s15, %s1045_s11 }
  0xf3   : > { %p800_p8 = scmp.ne.s32.totalorder %s315_s15, %s799_s14  ;;  %p805_p10 = scmp.lt.s32.totalorder %s1069_s13, %s799_s14 }
  0xf5   : > { %p806_p12 = por %p805_p10, %p804_p9 }
  0xf7   : > { %p807_p1 = pnand %p806_p12, %p800_p8 }
  0xf9   : > { %810 = shalt.err (!%p807_p1)  }
  0xfa   : > { %317 = dma.hbm_to_vmem [thread:$0]  %s305_s12, 16, %s315_s15, [#allocation3] }
  0xfb   : > { %s134_s25 = scalar_lea.vmem [#allocation9], %s1041_s5 }
  0xfc   : > { %869 = dma.done.wait [#allocation3], 128 }
  0xfd   : > { %870 = vsyncadd [#allocation3], 4294967168  ;;  %s354_s10 = sshll.u32 %s134_s25, 4  ;;  %v335_v0 = vld [vmem:[#allocation2] sm:$0xff]  ;;  %v336_v1 = vld [vmem:[#allocation6] sm:$0xff]  ;;  %s1172_s11 = scalar_lea.hbm %s1224_s3, %s1037_s30  ;;  %s1174_s10 = int_to_ptr.vmem [resolvable:$true] %s354_s10 }
  0xfe   : > { %v337_v2 = vadd.f32 %v336_v1, %v335_v0  ;;  %s1241_s5 = sand.u32 1, %s881_s23   ;;  %s811_s15 = scalar_lea.vmem %s1174_s10, 128 }
  0xff   : > { %s340_s13 = scalar_lea.sflag [#allocation8], %s1241_s5  ;;  %p812_p3 = scmp.ne.s32.totalorder %s1174_s10, %s811_s15 }
 0x100   : > { %338 = vst [vmem:[%s134_s25] sm:$0xff] %v337_v2  ;;  %p1242_p5 = scmp.ne.s32.totalorder %s1233_s4, 0  ;;  %s909_s29 = smov [#allocation9]  }
 0x101   : > { %s815_s0 = sshll.u32 %s909_s29, 4  ;;  %s816_s0 = int_to_ptr.vmem [resolvable:$false] %s815_s0 }
 0x102   : > { %p813_p7 = pnand %p812_p3, %p1242_p5  ;;  %s817_s28 = scalar_lea.vmem %s816_s0, 256 }
 0x103   : > { %p818_p13 = scmp.lt.s32.totalorder %s1174_s10, %s816_s0  ;;  %p819_p0 = scmp.lt.s32.totalorder %s817_s28, %s811_s15 }
 0x104   : > { %p814_p11 = pneg %p813_p7 }
 0x105   : > { %p820_p2 = por %p819_p0, %p818_p13 }
 0x107   : > { %p821_p4 = pnand %p820_p2, %p814_p11 }
 0x109   : > { %824 = shalt.err (!%p821_p4)
}
 0x10a   : > { %s825_s30 = scalar_lea.hbm %s1172_s11, 128  ;;  %s829_s20 = scalar_lea.hbm %s1224_s3, 256 }
 0x10b   : > { %p826_p6 = scmp.ne.s32.totalorder %s1172_s11, %s825_s30  ;;  %p830_p10 = scmp.lt.u32.totalorder %s1172_s11, %s1224_s3 }
 0x10c   : > { %p831_p12 = scmp.lt.u32.totalorder %s829_s20, %s825_s30  ;;  %p833_p3 = scmp.lt.u32.totalorder %s825_s30, %s1172_s11 }
 0x10d   : > { %p827_p8 = pnand %p826_p6, %p1242_p5 }
 0x10e   : > { %p832_p1 = por %p831_p12, %p830_p10 }
 0x10f   : > { %p828_p9 = pneg %p827_p8 }
 0x110   : > { %p834_p7 = por %p833_p3, %p832_p1 }
 0x112   : > { %p835_p11 = pnand %p834_p7, %p828_p9 }
 0x114   : > { %838 = shalt.err (!%p835_p11)
}
 0x115   : > { %510 = dma.vmem_to_hbm [thread:$0]  (%p1242_p5), %s1174_s10, 128, %s1172_s11, %s340_s13  }
 0x116 PF: > { %p522_p13 = scmp.ge.s32.totalorder %s897_s27, 2  ;;  %s366_s9 = sand.u32 1, %s877_s22  }
 0x117   : > { %p1243_p0 = scmp.ne.s32.totalorder %s1234_s6, 0  ;;  %s367_s19 = scalar_lea.sflag [#allocation8], %s366_s9 }
 0x119   : > { %p517_p2 = pnand %p522_p13, %p1243_p0 }
 0x11b   : > { %872 = dma.done.wait (!%p517_p2), %s367_s19, 128  }
 0x11c   : > { %874 = vsyncadd (!%p517_p2), %s367_s19, 4294967168  ;;  %s21_s27 = sadd.s32 1, %s897_s27   ;;  %s1244_s4 = sld [smem:[#allocation32_spill]] }
 0x11d   : > { %p18_p4 = scmp.ge.s32.totalorder %s21_s27, 4   ;;  %s1245_s22 = smov %s881_s23 }
 0x11e   : > { %s1246_s23 = smov %s885_s24  ;;  %s1247_s24 = smov %s995_s7 }
 0x11f   : > { %s1248_s25 = smov %s893_s26  ;;  %20 = sbr.rel (!%p18_p4) target bundleno = 17 (0x11), region = 113 }
 0x122   : > { %s1249_s26 = smov %s1244_s4 }
 0x126   :  { %372 = vsyncpa [#allocation7], 1 }
 0x127   :  { %374 = vsyncpa [#allocation7 + $0x1], 1 }
 0x128   :  { %375 = vsyncpa [#allocation8], 1 }
 0x129   :  { %377 = vsyncpa [#allocation8 + $0x1], 1 }
 0x12a   :  { %378 = vsyncmov [#allocation3] }
 0x12d   :  { %s379_s6 = vpop.sfrf %378 }
 0x12e   :  { %p501_p5 = scmp.ne.s32.totalorder %s379_s6, 0 }
 0x130   :  { %383 = shalt.err (%p501_p5)  }
 0x131   :  { %385 = vsyncmov [#allocation3 + $0x1] }
 0x134   :  { %s386_s18 = vpop.sfrf %385 }
 0x135   :  { %p502_p6 = scmp.ne.s32.totalorder %s386_s18, 0 }
 0x137   :  { %390 = shalt.err (%p502_p6)  }
 0x138   :  { %392 = vsyncmov [#allocation3 + $0x2] }
 0x13b   :  { %s393_s7 = vpop.sfrf %392 }
 0x13c   :  { %p503_p8 = scmp.ne.s32.totalorder %s393_s7, 0 }
 0x13e   :  { %397 = shalt.err (%p503_p8)  }
 0x13f   :  { %399 = vsyncmov [#allocation3 + $0x3] }
 0x142   :  { %s400_s14 = vpop.sfrf %399 }
 0x143   :  { %p504_p9 = scmp.ne.s32.totalorder %s400_s14, 0 }
 0x145   :  { %404 = shalt.err (%p504_p9)  }
 0x146   :  { %406 = vsyncmov [#allocation3 + $0x4] }
 0x149   :  { %s407_s1 = vpop.sfrf %406 }
 0x14a   :  { %p505_p10 = scmp.ne.s32.totalorder %s407_s1, 0 }
 0x14c   :  { %411 = shalt.err (%p505_p10)  }

</bundles_post_ra>
